<compile_context>
chip_gen: v5e
topology: v5e:2x2
jax: 0.10.0
libtpu: 0.0.40
codegen_flags: <defaults>
</compile_context>

<pallas_src>
import functools
import math

import jax
import jax.numpy as jnp
from jax.experimental import pallas as pl
from jax.experimental.pallas import tpu as pltpu


def _partial_sums_kernel(recon_ref, target_ref, sq_ref, ab_ref, mx_ref, *,
                         steps, tile_r, rows_true, need_mask):
    """Accumulates per-core partials: sum(d^2), sum(|d|), max(target)."""
    i = pl.program_id(1)  # reduction ("arbitrary") axis

    @pl.when(i == 0)
    def _():
        sq_ref[...] = jnp.zeros(sq_ref.shape, jnp.float32)
        ab_ref[...] = jnp.zeros(ab_ref.shape, jnp.float32)
        mx_ref[...] = jnp.full(mx_ref.shape, -jnp.inf, jnp.float32)

    # Native-dtype tiles, cast per-tile (hidden under the DMA).
    r = recon_ref[...].astype(jnp.float32)
    t = target_ref[...].astype(jnp.float32)
    d = r - t

    if need_mask:
        # Logical (unclamped) row-block index -> global row ids.  Rows past
        # rows_true are either the ragged tail of the last block or grid
        # over-coverage (phantom blocks clamped in the index_map); mask them
        # out of the sums AND out of the running max.
        rb = pl.program_id(0) * steps + i
        row_ids = jax.lax.broadcasted_iota(jnp.int32, d.shape, 0) + rb * tile_r
        valid = row_ids < rows_true
        d = jnp.where(valid, d, 0.0)
        t = jnp.where(valid, t, -jnp.inf)

    # Lane-preserving (sublane-only) per-step reduction; the single cross-lane
    # reduce happens once, outside the kernel, on the tiny partial arrays.
    sq_ref[0:1, :] += jnp.sum(d * d, axis=0, keepdims=True)
    ab_ref[0:1, :] += jnp.sum(jnp.abs(d), axis=0, keepdims=True)
    mx_ref[0:1, :] = jnp.maximum(mx_ref[0:1, :], jnp.max(t, axis=0, keepdims=True))


@functools.partial(jax.jit, static_argnames=("gamma", "block_bytes"))
def hybrid_loss(recon, target, mu, logvar, gamma=0.1, block_bytes=4 * 1024 * 1024):
    assert recon.shape == target.shape, "recon/target must have the same shape"
    shape = recon.shape
    n_fft = shape[-1]                      # torch.fft.fft runs along the last axis
    total = math.prod(shape)
    itemsize = max(jnp.dtype(recon.dtype).itemsize, jnp.dtype(target.dtype).itemsize)

    # ---- choose a lane-dense 2-D view (free reshape; never copies in HBM) ----
    view = None
    for c in (512, 256, 128):
        if total % c == 0 and total >= 8 * c:
            view = (total // c, c)
            break
    if view is None:
        # Fallback: natural (leading, last-dim) view.  Last dim equals the full
        # array dim, so the BlockSpec stays legal for any N.
        # TODO(synk): for 128-indivisible last dims that are very large, a single
        # row-block can exceed the VMEM budget; add column tiling if ever needed.
        view = (total // n_fft, n_fft)
    R, C = view
    recon2d = recon.reshape(R, C)
    target2d = target.reshape(R, C)

    # ---- row tiling: biggest block within a per-input per-buffer byte budget ----
    budget_rows = max(1, block_bytes // (C * itemsize))
    if budget_rows >= R:
        tile_r = R                                   # single block; full dim is always legal
    else:
        tile_r = max(32, (budget_rows // 32) * 32)   # 32 covers f32/bf16/int8 sublane tiles
        if tile_r >= R:
            tile_r = R
    nblk = -(-R // tile_r)

    # Two-way "parallel" split (engages both TensorCores on v7x; a harmless
    # sequential outer loop on single-core v5e/v6e).
    ncores = 1 if nblk == 1 else 2
    steps = -(-nblk // ncores)
    # Mask needed if the last block is ragged or the grid over-covers the rows.
    need_mask = (nblk * tile_r != R) or (ncores * steps != nblk)

    def in_map(p, i):
        # Clamp phantom blocks (grid over-coverage) onto the last real block;
        # their rows are masked out in-kernel via the *unclamped* index.
        return (jnp.minimum(p * steps + i, nblk - 1), 0)

    kernel = functools.partial(_partial_sums_kernel, steps=steps, tile_r=tile_r,
                               rows_true=R, need_mask=need_mask)

    out_struct = jax.ShapeDtypeStruct((ncores * 8, C), jnp.float32)
    out_spec = pl.BlockSpec((8, C), lambda p, i: (p, 0))

    sq_p, ab_p, mx_p = pl.pallas_call(
        kernel,
        out_shape=(out_struct, out_struct, out_struct),
        grid_spec=pltpu.PrefetchScalarGridSpec(
            num_scalar_prefetch=0,
            grid=(ncores, steps),
            in_specs=[
                pl.BlockSpec((tile_r, C), in_map),   # recon  (native dtype)
                pl.BlockSpec((tile_r, C), in_map),   # target (native dtype)
            ],
            out_specs=(out_spec, out_spec, out_spec),
        ),
        compiler_params=pltpu.CompilerParams(
            dimension_semantics=("parallel", "arbitrary"),
            vmem_limit_bytes=32 * 1024 * 1024,
        ),
    )(recon2d, target2d)

    # ---- tiny epilogue in plain XLA (cross-lane reduces + KL + final mix) ----
    sumsq = jnp.sum(sq_p)
    sumabs = jnp.sum(ab_p)
    tmax = jnp.max(mx_p)

    mu32 = mu.astype(jnp.float32)
    lv32 = logvar.astype(jnp.float32)
    kl_div = -0.5 * jnp.mean(1.0 + lv32 - mu32 * mu32 - jnp.exp(lv32))

    inv_n = 1.0 / float(total)
    mse = sumsq * inv_n
    mae = sumabs * inv_n
    alpha = jax.nn.sigmoid(jnp.abs(tmax) / 600.0)
    # Parseval (exact for unnormalized torch.fft.fft along the last axis):
    #   0.5*mse + 0.2*freq_loss == (0.5 + 0.2*n_fft) * mse
    return (0.5 + 0.2 * float(n_fft)) * mse + 0.3 * mae + alpha * float(gamma) * kl_div


def _reference(recon, target, mu, logvar, gamma=0.1):
    # Pure-JAX mirror of the PyTorch forward (uses an explicit FFT).
    diff = recon - target
    mse = jnp.mean(diff * diff)
    mae = jnp.mean(jnp.abs(diff))
    rf = jnp.fft.fft(recon)
    tf = jnp.fft.fft(target)
    freq = jnp.mean((rf.real - tf.real) ** 2) + jnp.mean((rf.imag - tf.imag) ** 2)
    kl = -0.5 * jnp.mean(1.0 + logvar - mu ** 2 - jnp.exp(logvar))
    alpha = jax.nn.sigmoid(jnp.abs(jnp.max(target)) / 600.0)
    return 0.5 * mse + 0.3 * mae + 0.2 * freq + alpha * gamma * kl


if __name__ == "__main__":
    key = jax.random.PRNGKey(0)
    k1, k2, k3, k4 = jax.random.split(key, 4)

    # Small shapes consistent with the module: (batch, signal_len) + (batch, latent).
    B, N, L = 8, 128, 32
    recon = jax.random.normal(k1, (B, N), dtype=jnp.float32)
    target = jax.random.normal(k2, (B, N), dtype=jnp.float32)
    mu = 0.5 * jax.random.normal(k3, (B, L), dtype=jnp.float32)
    logvar = 0.1 * jax.random.normal(k4, (B, L), dtype=jnp.float32)

    loss = jax.block_until_ready(hybrid_loss(recon, target, mu, logvar, gamma=0.1))
    ref = _reference(recon, target, mu, logvar, gamma=0.1)
    assert jnp.allclose(loss, ref, rtol=1e-3, atol=1e-3), (loss, ref)

    # Also exercise the general path (native bf16 streaming, 2-way parallel split,
    # ragged last block, clamped phantom block) by forcing a small block budget.
    B2, N2, L2 = 200, 384, 16
    r2 = jax.random.normal(k1, (B2, N2), dtype=jnp.bfloat16)
    t2 = jax.random.normal(k2, (B2, N2), dtype=jnp.bfloat16)
    m2 = 0.5 * jax.random.normal(k3, (B2, L2), dtype=jnp.float32)
    lv2 = 0.1 * jax.random.normal(k4, (B2, L2), dtype=jnp.float32)
    loss2 = jax.block_until_ready(
        hybrid_loss(r2, t2, m2, lv2, gamma=0.1, block_bytes=64 * 1024))
    ref2 = _reference(r2.astype(jnp.float32), t2.astype(jnp.float32), m2, lv2, gamma=0.1)
    assert jnp.allclose(loss2, ref2, rtol=1e-3, atol=1e-3), (loss2, ref2)

    print("KERNEL_OK")
</pallas_src>

<mosaic_0001>
module attributes {stable_mosaic.version = 11 : i64} {
  func.func @_partial_sums_kernel(%arg0: i32, %arg1: i32, %arg2: memref<8x128xf32, #tpu.memory_space<vmem>>, %arg3: memref<8x128xf32, #tpu.memory_space<vmem>>, %arg4: memref<8x128xf32, #tpu.memory_space<vmem>>, %arg5: memref<8x128xf32, #tpu.memory_space<vmem>>, %arg6: memref<8x128xf32, #tpu.memory_space<vmem>>) attributes {dimension_semantics = [#tpu.dimension_semantics<parallel>, #tpu.dimension_semantics<arbitrary>], iteration_bounds = array<i64: 1, 1>, scalar_prefetch = 0 : i64, scratch_operands = 0 : i64, tpu.core_type = #tpu.core_type<tc>, window_params = [{transform_indices = @transform_0, window_bounds = array<i64: 8, 128>}, {transform_indices = @transform_1, window_bounds = array<i64: 8, 128>}, {transform_indices = @transform_2, window_bounds = array<i64: 8, 128>}, {transform_indices = @transform_3, window_bounds = array<i64: 8, 128>}, {transform_indices = @transform_4, window_bounds = array<i64: 8, 128>}]} {
    %c0_i32 = arith.constant 0 : i32
    %0 = arith.cmpi eq, %arg1, %c0_i32 : i32
    %1 = arith.extui %0 : i1 to i32
    %c0_i32_0 = arith.constant 0 : i32
    %2 = arith.cmpi ne, %1, %c0_i32_0 : i32
    scf.if %2 {
      %cst_18 = arith.constant 0.000000e+00 : f32
      %23 = vector.broadcast %cst_18 : f32 to vector<8x128xf32>
      %c0_19 = arith.constant 0 : index
      %c0_20 = arith.constant 0 : index
      %24 = vector.load %arg4[%c0_19, %c0_20] : memref<8x128xf32, #tpu.memory_space<vmem>>, vector<8x128xf32>
      tpu.vector_store %arg4[%c0_19, %c0_20], %23 {strides = array<i32>} : memref<8x128xf32, #tpu.memory_space<vmem>>, vector<8x128xf32>,
      %cst_21 = arith.constant 0.000000e+00 : f32
      %25 = vector.broadcast %cst_21 : f32 to vector<8x128xf32>
      %c0_22 = arith.constant 0 : index
      %c0_23 = arith.constant 0 : index
      %26 = vector.load %arg5[%c0_22, %c0_23] : memref<8x128xf32, #tpu.memory_space<vmem>>, vector<8x128xf32>
      tpu.vector_store %arg5[%c0_22, %c0_23], %25 {strides = array<i32>} : memref<8x128xf32, #tpu.memory_space<vmem>>, vector<8x128xf32>,
      %cst_24 = arith.constant 0xFF800000 : f32
      %27 = vector.broadcast %cst_24 : f32 to vector<8x128xf32>
      %c0_25 = arith.constant 0 : index
      %c0_26 = arith.constant 0 : index
      %28 = vector.load %arg6[%c0_25, %c0_26] : memref<8x128xf32, #tpu.memory_space<vmem>>, vector<8x128xf32>
      tpu.vector_store %arg6[%c0_25, %c0_26], %27 {strides = array<i32>} : memref<8x128xf32, #tpu.memory_space<vmem>>, vector<8x128xf32>,
    } else {
    }
    %c0 = arith.constant 0 : index
    %c0_1 = arith.constant 0 : index
    %3 = vector.load %arg2[%c0, %c0_1] : memref<8x128xf32, #tpu.memory_space<vmem>>, vector<8x128xf32>
    %c0_2 = arith.constant 0 : index
    %c0_3 = arith.constant 0 : index
    %4 = vector.load %arg3[%c0_2, %c0_3] : memref<8x128xf32, #tpu.memory_space<vmem>>, vector<8x128xf32>
    %5 = arith.subf %3, %4 : vector<8x128xf32>
    %c0_4 = arith.constant 0 : index
    %c0_5 = arith.constant 0 : index
    %6 = vector.load %arg4[%c0_4, %c0_5] : memref<8x128xf32, #tpu.memory_space<vmem>>, vector<1x128xf32>
    %7 = arith.mulf %5, %5 : vector<8x128xf32>
    %cst = arith.constant dense<0.000000e+00> : vector<128xf32>
    %8 = vector.multi_reduction <add>, %7, %cst [0] : vector<8x128xf32> to vector<128xf32>
    %9 = vector.shape_cast %8 : vector<128xf32> to vector<1x128xf32>
    %10 = arith.addf %6, %9 : vector<1x128xf32>
    %c0_6 = arith.constant 0 : index
    %c0_7 = arith.constant 0 : index
    %11 = vector.load %arg4[%c0_6, %c0_7] : memref<8x128xf32, #tpu.memory_space<vmem>>, vector<1x128xf32>
    tpu.vector_store %arg4[%c0_6, %c0_7], %10 {strides = array<i32>} : memref<8x128xf32, #tpu.memory_space<vmem>>, vector<1x128xf32>,
    %c0_8 = arith.constant 0 : index
    %c0_9 = arith.constant 0 : index
    %12 = vector.load %arg5[%c0_8, %c0_9] : memref<8x128xf32, #tpu.memory_space<vmem>>, vector<1x128xf32>
    %13 = math.absf %5 : vector<8x128xf32>
    %cst_10 = arith.constant dense<0.000000e+00> : vector<128xf32>
    %14 = vector.multi_reduction <add>, %13, %cst_10 [0] : vector<8x128xf32> to vector<128xf32>
    %15 = vector.shape_cast %14 : vector<128xf32> to vector<1x128xf32>
    %16 = arith.addf %12, %15 : vector<1x128xf32>
    %c0_11 = arith.constant 0 : index
    %c0_12 = arith.constant 0 : index
    %17 = vector.load %arg5[%c0_11, %c0_12] : memref<8x128xf32, #tpu.memory_space<vmem>>, vector<1x128xf32>
    tpu.vector_store %arg5[%c0_11, %c0_12], %16 {strides = array<i32>} : memref<8x128xf32, #tpu.memory_space<vmem>>, vector<1x128xf32>,
    %c0_13 = arith.constant 0 : index
    %c0_14 = arith.constant 0 : index
    %18 = vector.load %arg6[%c0_13, %c0_14] : memref<8x128xf32, #tpu.memory_space<vmem>>, vector<1x128xf32>
    %cst_15 = arith.constant dense<0xFF800000> : vector<128xf32>
    %19 = vector.multi_reduction <maximumf>, %4, %cst_15 [0] : vector<8x128xf32> to vector<128xf32>
    %20 = vector.shape_cast %19 : vector<128xf32> to vector<1x128xf32>
    %21 = arith.maximumf %18, %20 : vector<1x128xf32>
    %c0_16 = arith.constant 0 : index
    %c0_17 = arith.constant 0 : index
    %22 = vector.load %arg6[%c0_16, %c0_17] : memref<8x128xf32, #tpu.memory_space<vmem>>, vector<1x128xf32>
    tpu.vector_store %arg6[%c0_16, %c0_17], %21 {strides = array<i32>} : memref<8x128xf32, #tpu.memory_space<vmem>>, vector<1x128xf32>,
    return
  }
  func.func @transform_0(%arg0: i32, %arg1: i32) -> (i32, i32) {
    %c1_i32 = arith.constant 1 : i32
    %0 = arith.muli %arg0, %c1_i32 : i32
    %1 = arith.addi %0, %arg1 : i32
    %c0_i32 = arith.constant 0 : i32
    %2 = arith.minsi %1, %c0_i32 : i32
    %c0_i32_0 = arith.constant 0 : i32
    %c0_i32_1 = arith.constant 0 : i32
    return %2, %c0_i32_0 : i32, i32
  }
  func.func @transform_1(%arg0: i32, %arg1: i32) -> (i32, i32) {
    %c1_i32 = arith.constant 1 : i32
    %0 = arith.muli %arg0, %c1_i32 : i32
    %1 = arith.addi %0, %arg1 : i32
    %c0_i32 = arith.constant 0 : i32
    %2 = arith.minsi %1, %c0_i32 : i32
    %c0_i32_0 = arith.constant 0 : i32
    %c0_i32_1 = arith.constant 0 : i32
    return %2, %c0_i32_0 : i32, i32
  }
  func.func @transform_2(%arg0: i32, %arg1: i32) -> (i32, i32) {
    %c0_i32 = arith.constant 0 : i32
    %c0_i32_0 = arith.constant 0 : i32
    return %arg0, %c0_i32 : i32, i32
  }
  func.func @transform_3(%arg0: i32, %arg1: i32) -> (i32, i32) {
    %c0_i32 = arith.constant 0 : i32
    %c0_i32_0 = arith.constant 0 : i32
    return %arg0, %c0_i32 : i32, i32
  }
  func.func @transform_4(%arg0: i32, %arg1: i32) -> (i32, i32) {
    %c0_i32 = arith.constant 0 : i32
    %c0_i32_0 = arith.constant 0 : i32
    return %arg0, %c0_i32 : i32, i32
  }
}

</mosaic_0001>

<bundles_post_ra>
// kernel: hybrid_loss.1
= control target key start
LH: loop header
LB: loop body
LE: loop exit
PB: predicated region body
PF: predicated region fallthrough
CT: control target
= control target key end

     0   :  { %10 = vsyncpa [#allocation3], 0  ;;  %s233_s0 = inlined_call_operand.hbm [shape: f32[8,128], index: 0, kind: input, shape index: {}]   ;;  %s234_s1 = inlined_call_operand.hbm [shape: f32[8,128], index: 1, kind: input, shape index: {}]   ;;  %s235_s2 = inlined_call_operand.vmem [shape: f32[8,128], index: 2, kind: output, shape index: {0}]   ;;  %s236_s3 = inlined_call_operand.vmem [shape: f32[8,128], index: 3, kind: output, shape index: {1}]   ;;  %s237_s4 = inlined_call_operand.vmem [shape: f32[8,128], index: 4, kind: output, shape index: {2}]  }
   0x1   :  { %s22_s17 = sshll.u32 %s233_s0, 4  ;;  %s23_s17 = int_to_ptr.hbm [resolvable:$true] %s22_s17 }
   0x2   :  { %11 = vsyncpa [#allocation5], 0  ;;  %s171_s18 = smov [#allocation2]   ;;  %s38_s22 = sshll.u32 %s234_s1, 4  ;;  %s39_s22 = int_to_ptr.hbm [resolvable:$true] %s38_s22 }
   0x3   :  { %s24_s19 = sshll.u32 %s171_s18, 4  ;;  %s172_s23 = smov [#allocation4]   ;;  %s25_s19 = int_to_ptr.vmem [resolvable:$true] %s24_s19 }
   0x4   :  { %27 = dma.hbm_to_vmem [thread:$0]  %s23_s17, 128, %s25_s19, [#allocation3]  }
   0x5   :  { %s40_s24 = sshll.u32 %s172_s23, 4  ;;  %s41_s24 = int_to_ptr.vmem [resolvable:$true] %s40_s24 }
   0x6   :  { %43 = dma.hbm_to_vmem [thread:$0]  %s39_s22, 128, %s41_s24, [#allocation5]  }
   0x7   :  { %167 = dma.done.wait [#allocation3], 128  }
   0x8   :  { %168 = vsyncadd [#allocation3], 4294967168 }
   0x9   :  { %169 = dma.done.wait [#allocation5], 128  }
   0xa   :  { %170 = vsyncadd [#allocation5], 4294967168  ;;  %v173_v0 = vmov 0.0   ;;  %v174_v1 = vmov -inf   ;;  %v65_v2 = vld [vmem:[#allocation2] sm:$0xff]  ;;  %v66_v3 = vld [vmem:[#allocation4] sm:$0xff] }
   0xb   :  { %62 = vst [vmem:[%s235_s2] sm:$0xff] %v173_v0  ;;  %v67_v4 = vsub.f32 %v65_v2, %v66_v3  ;;  %v89_v5 = vrot.slane %v66_v3, 4 }
   0xc   :  { %63 = vst [vmem:[%s236_s3] sm:$0xff] %v173_v0 }
   0xd   :  { %64 = vst [vmem:[%s237_s4] sm:$0xff] %v174_v1  ;;  %v69_v6 = vmul.f32 %v67_v4, %v67_v4  ;;  %v79_v7 = vand.u32 2147483647, %v67_v4  ;;  %v90_v8 = vmax.f32 %v66_v3, %v89_v5 }
   0xf   :  { %v70_v9 = vrot.slane %v69_v6, 4  ;;  %v80_v10 = vrot.slane %v79_v7, 4  ;;  %v91_v11 = vrot.slane %v90_v8, 2 }
  0x11   :  { %v71_v12 = vadd.f32 %v70_v9, %v69_v6  ;;  %v81_v13 = vadd.f32 %v80_v10, %v79_v7  ;;  %v92_v14 = vmax.f32 %v90_v8, %v91_v11 }
  0x12   :  { %v68_v25 = vld [vmem:[%s235_s2] sm:$0x1] }
  0x13   :  { %v72_v15 = vrot.slane %v71_v12, 2  ;;  %v82_v16 = vrot.slane %v81_v13, 2  ;;  %v93_v17 = vrot.slane %v92_v14, 1  ;;  %v78_v26 = vld [vmem:[%s236_s3] sm:$0x1] }
  0x14   :  { %v88_v18 = vld [vmem:[%s237_s4] sm:$0x1] }
  0x15   :  { %v73_v19 = vadd.f32 %v72_v15, %v71_v12  ;;  %v83_v20 = vadd.f32 %v82_v16, %v81_v13  ;;  %v94_v21 = vmax.f32 %v92_v14, %v93_v17 }
  0x17   :  { %v74_v22 = vrot.slane %v73_v19, 1  ;;  %v84_v23 = vrot.slane %v83_v20, 1  ;;  %v95_v24 = vmax.f32 %v88_v18, %v94_v21 }
  0x19   :  { %v75_v27 = vadd.f32 %v74_v22, %v73_v19  ;;  %v85_v28 = vadd.f32 %v84_v23, %v83_v20  ;;  %96 = vst [vmem:[%s237_s4] sm:$0x1] %v95_v24 }
  0x1b   :  { %v76_v29 = vadd.f32 %v75_v27, %v68_v25  ;;  %v86_v30 = vadd.f32 %v85_v28, %v78_v26 }
  0x1d   :  { %77 = vst [vmem:[%s235_s2] sm:$0x1] %v76_v29 }
  0x1e   :  { %87 = vst [vmem:[%s236_s3] sm:$0x1] %v86_v30 }
  0x1f   :  { %109 = vsyncpa [#allocation3], 1 }
  0x20   :  { %110 = vsyncpa [#allocation5], 1 }

</bundles_post_ra>
